<compile_context>
chip_gen: v6e
topology: v6e:2x2x1
jax: 0.10.0
libtpu: 0.0.40
codegen_flags: <defaults>
</compile_context>

<pallas_src>
import functools

import jax
import jax.numpy as jnp
from jax import lax
from jax.experimental import pallas as pl
from jax.experimental.pallas import tpu as pltpu

_EPS = 1e-5


# ---------------------------------------------------------------------------
# In-kernel helpers
# ---------------------------------------------------------------------------
def _bn_train(y, t_mat, gb, inv_count):
    """BatchNorm2d (train stats, biased var) on a lane-dense (rows, W*C) slab.

    t_mat = kron(ones(W, W), eye(C)) maps per-lane sums to per-channel sums that
    come back already tiled across the W blocks of the lane axis, so the whole
    normalization stays lane dense.  gb = (2, W*C): row 0 gamma, row 1 beta.
    """
    s1 = jnp.sum(y, axis=0, keepdims=True)                      # (1, L)
    s2 = jnp.sum(jnp.square(y), axis=0, keepdims=True)          # (1, L)
    ch = jnp.dot(jnp.concatenate([s1, s2], axis=0), t_mat,
                 preferred_element_type=jnp.float32)            # (2, L)
    mean = ch[0:1] * inv_count
    var = ch[1:2] * inv_count - mean * mean                     # one-pass biased var
    scale = gb[0:1] * lax.rsqrt(var + _EPS)                     # rsqrt -> EUP slot
    shift = gb[1:2] - mean * scale
    return y * scale + shift


def _fused_block_kernel(x_ref, w1_ref, w2_ref, t_ref, gb1_ref, gb2_ref, *rest,
                        mode, N, H, W, C):
    """Whole _ResNetBlock forward on lane-dense rows, fully VMEM resident."""
    WC = W * C
    NH = N * H
    if mode == "down":
        (wd_ref, se_ref, so_ref, he_ref, ho_ref, td_ref, gbd_ref,
         out_ref, pad_ref) = rest
    elif mode == "up":
        a0_ref, b01_ref, tu_ref, gbu_ref, out_ref, pad_ref = rest
    else:
        out_ref, pad_ref = rest

    t_main = t_ref[...]
    inv_cnt_main = 1.0 / float(N * H * W)

    def conv_band(w_ref):
        # 3x3 conv == one matmul: dy taps are cheap H-slices of the padded
        # scratch; dx taps / W-padding are folded into the banded weights.
        slabs = [pad_ref[:, dy:dy + H, :].reshape(NH, WC) for dy in range(3)]
        slab = jnp.concatenate(slabs, axis=-1)                  # (N*H, 3*W*Cin)
        return jnp.dot(slab, w_ref[...], preferred_element_type=jnp.float32)

    # Zero the H-padded scratch once; only interior rows are rewritten below,
    # so the two border rows stay zero for every conv of the block.
    pad_ref[...] = jnp.zeros(pad_ref.shape, jnp.float32)

    x_rows = x_ref[...].astype(jnp.float32)                     # (N*H, W*C)

    # conv1: Conv3x3(no bias) -> ReLU -> BN(train stats)
    pad_ref[:, 1:H + 1, :] = x_rows.reshape(N, H, WC)
    y1 = _bn_train(jnp.maximum(conv_band(w1_ref), 0.0),
                   t_main, gb1_ref[...], inv_cnt_main)

    # conv2 (re-pad y1 inside the kernel) + residual add (after BN2)
    pad_ref[:, 1:H + 1, :] = y1.reshape(N, H, WC)
    y2 = _bn_train(jnp.maximum(conv_band(w2_ref), 0.0),
                   t_main, gb2_ref[...], inv_cnt_main)
    xres = y2 + x_rows

    if mode is None:
        out_ref[...] = xres.astype(out_ref.dtype)

    elif mode == "down":
        # Conv3x3(C->2C, no bias) -> ReLU -> MaxPool2x2 -> BN
        pad_ref[:, 1:H + 1, :] = xres.reshape(N, H, WC)
        yd = jnp.maximum(conv_band(wd_ref), 0.0)                # (N*H, W*2C)
        # 2x2 max pool via 0/1 selection matmuls (stays lane dense, no retiling):
        #   W direction: max of even / odd pixel-block selections,
        #   H direction: max of even / odd row selections.
        yw = jnp.maximum(
            jnp.dot(yd, se_ref[...], preferred_element_type=jnp.float32),
            jnp.dot(yd, so_ref[...], preferred_element_type=jnp.float32))
        yh = jnp.maximum(
            jnp.dot(he_ref[...], yw, preferred_element_type=jnp.float32),
            jnp.dot(ho_ref[...], yw, preferred_element_type=jnp.float32))
        inv_cnt = 1.0 / float(N * (H // 2) * (W // 2))
        out_ref[...] = _bn_train(yh, td_ref[...], gbd_ref[...],
                                 inv_cnt).astype(out_ref.dtype)

    else:  # mode == "up"
        # ConvTranspose2d(C->C//2, k=3, s=2, p=1, op=1, no bias) via sub-pixel
        # phases: even output rows = xres @ A0,
        #         odd  output rows = [xres ; next_row] @ [B0 ; B1].
        pad_ref[:, 1:H + 1, :] = xres.reshape(N, H, WC)
        nxt = pad_ref[:, 2:H + 2, :].reshape(NH, WC)            # row h+1 (zero at h=H-1)
        r0 = jnp.dot(xres, a0_ref[...], preferred_element_type=jnp.float32)
        r1 = jnp.dot(jnp.concatenate([xres, nxt], axis=-1), b01_ref[...],
                     preferred_element_type=jnp.float32)
        y = jnp.maximum(jnp.concatenate([r0, r1], axis=0), 0.0)  # (2*N*H, 2W*Cu)
        inv_cnt = 1.0 / float(N * (2 * H) * (2 * W))
        y = _bn_train(y, tu_ref[...], gbu_ref[...], inv_cnt)
        out_ref[0, :, :] = y[:NH].astype(out_ref.dtype)          # even rows (phase 0)
        out_ref[1, :, :] = y[NH:].astype(out_ref.dtype)          # odd rows  (phase 1)


# ---------------------------------------------------------------------------
# Wrapper-side constant builders (run once under jit, tiny)
# ---------------------------------------------------------------------------
def _band_weights(w_hwio, W):
    """HWIO (3,3,Cin,Cout) -> (3*W*Cin, W*Cout) block-banded conv matrix.

    Block (w_in, w_out) of the dy-th vertical slice equals w[dy, dx] where
    dx = w_in - w_out + 1 (zero outside the band), encoding both the dx taps and
    the zero padding along W.
    """
    Cin, Cout = w_hwio.shape[2], w_hwio.shape[3]
    eye_w = [jnp.eye(W, k=1 - dx, dtype=jnp.float32) for dx in range(3)]
    blocks = []
    for dy in range(3):
        m = jnp.zeros((W * Cin, W * Cout), jnp.float32)
        for dx in range(3):
            m = m + jnp.kron(eye_w[dx], w_hwio[dy, dx].astype(jnp.float32))
        blocks.append(m)
    return jnp.concatenate(blocks, axis=0)


def _bn_tile_matrix(reps, C):
    return jnp.kron(jnp.ones((reps, reps), jnp.float32),
                    jnp.eye(C, dtype=jnp.float32))


def _bn_gamma_beta(gamma, beta, reps):
    return jnp.stack([jnp.tile(gamma.astype(jnp.float32), reps),
                      jnp.tile(beta.astype(jnp.float32), reps)], axis=0)


def _pool_selectors(N, H, W, C2):
    i = jnp.arange(W // 2)
    sel_e = jnp.zeros((W, W // 2), jnp.float32).at[2 * i, i].set(1.0)
    sel_o = jnp.zeros((W, W // 2), jnp.float32).at[2 * i + 1, i].set(1.0)
    eye_c = jnp.eye(C2, dtype=jnp.float32)
    se = jnp.kron(sel_e, eye_c)                     # (W*C2, (W//2)*C2)
    so = jnp.kron(sel_o, eye_c)
    r = jnp.arange(N * (H // 2))
    n, h = r // (H // 2), r % (H // 2)
    he = jnp.zeros((N * (H // 2), N * H), jnp.float32).at[r, n * H + 2 * h].set(1.0)
    ho = jnp.zeros((N * (H // 2), N * H), jnp.float32).at[r, n * H + 2 * h + 1].set(1.0)
    return se, so, he, ho


def _up_phase_matrices(w_t, W):
    """PyTorch ConvTranspose2d weight (Cin, Cu, 3, 3) -> sub-pixel phase matrices.

    A0  : (W*Cin, 2W*Cu)   even output rows, from input row h
    B01 : (2*W*Cin, 2W*Cu) odd output rows, from [input row h ; input row h+1]
    """
    wf = jnp.transpose(jnp.flip(w_t.astype(jnp.float32), axis=(2, 3)),
                       (2, 3, 0, 1))                # flipped kernel, HWIO
    i = jnp.arange(W)
    ga = jnp.zeros((W, 2 * W), jnp.float32).at[i, 2 * i].set(1.0)
    gb = jnp.zeros((W, 2 * W), jnp.float32).at[i, 2 * i + 1].set(1.0)
    gc = jnp.zeros((W, 2 * W), jnp.float32).at[i[1:], 2 * i[1:] - 1].set(1.0)

    def phase(ky):
        return (jnp.kron(ga, wf[ky, 1]) + jnp.kron(gb, wf[ky, 0])
                + jnp.kron(gc, wf[ky, 2]))

    a0 = phase(1)
    b01 = jnp.concatenate([phase(0), phase(2)], axis=0)
    return a0, b01


# ---------------------------------------------------------------------------
# _ResNetBlock forward (wrapper, NCHW in / NCHW out)
# ---------------------------------------------------------------------------
def _vmem_spec():
    return pl.BlockSpec(memory_space=pltpu.MemorySpace.VMEM)


def resnet_block_forward(x_nchw, params, block_type):
    N, C, H, W = x_nchw.shape
    if block_type == "down":
        assert H % 2 == 0 and W % 2 == 0, "down path needs even H, W"
    if block_type == "up":
        assert C % 2 == 0, "up path needs even C"
    WC = W * C

    # NCHW -> lane-dense rows (N*H, W*C); W*C == 128 in the test config.
    x_rows = jnp.transpose(x_nchw, (0, 2, 3, 1)).reshape(N * H, WC)

    w1 = _band_weights(params["w1"], W)
    w2 = _band_weights(params["w2"], W)
    t_main = _bn_tile_matrix(W, C)
    gb1 = _bn_gamma_beta(params["g1"], params["b1"], W)
    gb2 = _bn_gamma_beta(params["g2"], params["b2"], W)
    args = [x_rows, w1, w2, t_main, gb1, gb2]

    if block_type == "down":
        C2 = 2 * C
        se, so, he, ho = _pool_selectors(N, H, W, C2)
        args += [_band_weights(params["w_down"], W), se, so, he, ho,
                 _bn_tile_matrix(W // 2, C2),
                 _bn_gamma_beta(params["g_down"], params["b_down"], W // 2)]
        out_shape = jax.ShapeDtypeStruct((N * (H // 2), (W // 2) * C2),
                                         x_nchw.dtype)
    elif block_type == "up":
        Cu = C // 2
        a0, b01 = _up_phase_matrices(params["w_up_t"], W)
        args += [a0, b01, _bn_tile_matrix(2 * W, Cu),
                 _bn_gamma_beta(params["g_up"], params["b_up"], 2 * W)]
        out_shape = jax.ShapeDtypeStruct((2, N * H, 2 * W * Cu), x_nchw.dtype)
    else:
        out_shape = jax.ShapeDtypeStruct((N * H, WC), x_nchw.dtype)

    kern = functools.partial(_fused_block_kernel, mode=block_type,
                             N=N, H=H, W=W, C=C)
    out = pl.pallas_call(
        kern,
        out_shape=out_shape,
        in_specs=[_vmem_spec() for _ in args],
        out_specs=_vmem_spec(),
        scratch_shapes=[pltpu.VMEM((N, H + 2, WC), jnp.float32)],
        compiler_params=pltpu.CompilerParams(vmem_limit_bytes=32 * 1024 * 1024),
    )(*args)

    if block_type == "down":
        out = out.reshape(N, H // 2, W // 2, 2 * C)
    elif block_type == "up":
        Cu = C // 2
        out = (out.reshape(2, N, H, 2 * W, Cu)
                  .transpose(1, 2, 0, 3, 4)
                  .reshape(N, 2 * H, 2 * W, Cu))
    else:
        out = out.reshape(N, H, W, C)
    return jnp.transpose(out, (0, 3, 1, 2))                     # NHWC -> NCHW


# ---------------------------------------------------------------------------
# Deterministic parameter init (shapes from the module's __init__)
# ---------------------------------------------------------------------------
def init_params(key, C, block_type):
    k1, k2, k3, k4 = jax.random.split(key, 4)
    f32 = jnp.float32
    params = {
        "w1": 0.1 * jax.random.normal(k1, (3, 3, C, C), f32),
        "g1": jnp.ones((C,), f32), "b1": jnp.zeros((C,), f32),
        "w2": 0.1 * jax.random.normal(k2, (3, 3, C, C), f32),
        "g2": jnp.ones((C,), f32), "b2": jnp.zeros((C,), f32),
    }
    if block_type == "down":
        params["w_down"] = 0.1 * jax.random.normal(k3, (3, 3, C, 2 * C), f32)
        params["g_down"] = jnp.ones((2 * C,), f32)
        params["b_down"] = jnp.zeros((2 * C,), f32)
    elif block_type == "up":
        # PyTorch ConvTranspose2d weight layout: (Cin, Cout, kH, kW)
        params["w_up_t"] = 0.1 * jax.random.normal(k4, (C, C // 2, 3, 3), f32)
        params["g_up"] = jnp.ones((C // 2,), f32)
        params["b_up"] = jnp.zeros((C // 2,), f32)
    return params


# ---------------------------------------------------------------------------
# Pure-JAX reference (same semantics) for a correctness check
# ---------------------------------------------------------------------------
def _ref_conv3x3(x, w):
    return lax.conv_general_dilated(x, w, (1, 1), "SAME",
                                    dimension_numbers=("NHWC", "HWIO", "NHWC"))


def _ref_bn(y, g, b):
    mean = jnp.mean(y, axis=(0, 1, 2), keepdims=True)
    var = jnp.mean((y - mean) ** 2, axis=(0, 1, 2), keepdims=True)
    return (y - mean) * lax.rsqrt(var + _EPS) * g + b


def _ref_layer(x, w, g, b):
    return _ref_bn(jnp.maximum(_ref_conv3x3(x, w), 0.0), g, b)


def _ref_maxpool2(y):
    N, H, W, C = y.shape
    y = jnp.max(y.reshape(N, H, W // 2, 2, C), axis=3)
    return jnp.max(y.reshape(N, H // 2, 2, W // 2, C), axis=2)


def _ref_up_weight(w_transpose_iokk):
    return jnp.transpose(jnp.flip(w_transpose_iokk, axis=(2, 3)), (2, 3, 0, 1))


def ref_forward(x_nchw, params, block_type):
    x = jnp.transpose(x_nchw, (0, 2, 3, 1))
    identity = x
    x = _ref_layer(x, params["w1"], params["g1"], params["b1"])
    x = _ref_layer(x, params["w2"], params["g2"], params["b2"]) + identity
    if block_type == "down":
        y = jnp.maximum(_ref_conv3x3(x, params["w_down"]), 0.0)
        y = _ref_maxpool2(y)
        x = _ref_bn(y, params["g_down"], params["b_down"])
    elif block_type == "up":
        w_eq = _ref_up_weight(params["w_up_t"])
        y = lax.conv_general_dilated(x, w_eq, window_strides=(1, 1),
                                     padding=[(1, 2), (1, 2)],
                                     lhs_dilation=(2, 2),
                                     dimension_numbers=("NHWC", "HWIO", "NHWC"))
        x = _ref_bn(jnp.maximum(y, 0.0), params["g_up"], params["b_up"])
    return jnp.transpose(x, (0, 3, 1, 2))


# ---------------------------------------------------------------------------
if __name__ == "__main__":
    key = jax.random.PRNGKey(0)
    kx, kp = jax.random.split(key)
    N, C, H, W = 2, 8, 16, 16
    x = jax.random.normal(kx, (N, C, H, W), jnp.float32)

    for bt in (None, "down", "up"):
        params = init_params(kp, C, bt)
        fwd = jax.jit(functools.partial(resnet_block_forward, block_type=bt))
        out = fwd(x, params)
        jax.block_until_ready(out)
        ref = ref_forward(x, params, bt)
        err = float(jnp.max(jnp.abs(out - ref)))
        if err > 2e-2:
            raise SystemExit(f"mismatch for block_type={bt}: max abs err {err}")

    print("KERNEL_OK")
</pallas_src>

<mosaic_0001>
module attributes {stable_mosaic.version = 11 : i64} {
  func.func @_fused_block_kernel(%arg0: memref<32x128xf32, #tpu.memory_space<vmem>>, %arg1: memref<384x128xf32, #tpu.memory_space<vmem>>, %arg2: memref<384x128xf32, #tpu.memory_space<vmem>>, %arg3: memref<128x128xf32, #tpu.memory_space<vmem>>, %arg4: memref<2x128xf32, #tpu.memory_space<vmem>>, %arg5: memref<2x128xf32, #tpu.memory_space<vmem>>, %arg6: memref<32x128xf32, #tpu.memory_space<vmem>>, %arg7: memref<2x18x128xf32, #tpu.memory_space<vmem>>) attributes {dimension_semantics = [], scalar_prefetch = 0 : i64, scratch_operands = 1 : i64, tpu.core_type = #tpu.core_type<tc>} {
    %c0 = arith.constant 0 : index
    %c0_0 = arith.constant 0 : index
    %0 = vector.load %arg3[%c0, %c0_0] : memref<128x128xf32, #tpu.memory_space<vmem>>, vector<128x128xf32>
    %cst = arith.constant 0.000000e+00 : f32
    %1 = vector.broadcast %cst : f32 to vector<2x18x128xf32>
    %c0_1 = arith.constant 0 : index
    %c0_2 = arith.constant 0 : index
    %c0_3 = arith.constant 0 : index
    %2 = vector.load %arg7[%c0_1, %c0_2, %c0_3] : memref<2x18x128xf32, #tpu.memory_space<vmem>>, vector<2x18x128xf32>
    tpu.vector_store %arg7[%c0_1, %c0_2, %c0_3], %1 {strides = array<i32>} : memref<2x18x128xf32, #tpu.memory_space<vmem>>, vector<2x18x128xf32>,
    %c0_4 = arith.constant 0 : index
    %c0_5 = arith.constant 0 : index
    %3 = vector.load %arg0[%c0_4, %c0_5] : memref<32x128xf32, #tpu.memory_space<vmem>>, vector<32x128xf32>
    %4 = vector.shape_cast %3 : vector<32x128xf32> to vector<2x16x128xf32>
    %c0_6 = arith.constant 0 : index
    %c1 = arith.constant 1 : index
    %c0_7 = arith.constant 0 : index
    %5 = vector.load %arg7[%c0_6, %c1, %c0_7] : memref<2x18x128xf32, #tpu.memory_space<vmem>>, vector<2x16x128xf32>
    tpu.vector_store %arg7[%c0_6, %c1, %c0_7], %4 {strides = array<i32>} : memref<2x18x128xf32, #tpu.memory_space<vmem>>, vector<2x16x128xf32>,
    %c0_8 = arith.constant 0 : index
    %c0_9 = arith.constant 0 : index
    %c0_10 = arith.constant 0 : index
    %6 = vector.load %arg7[%c0_8, %c0_9, %c0_10] : memref<2x18x128xf32, #tpu.memory_space<vmem>>, vector<2x16x128xf32>
    %7 = vector.shape_cast %6 : vector<2x16x128xf32> to vector<32x128xf32>
    %c0_11 = arith.constant 0 : index
    %c1_12 = arith.constant 1 : index
    %c0_13 = arith.constant 0 : index
    %8 = vector.load %arg7[%c0_11, %c1_12, %c0_13] : memref<2x18x128xf32, #tpu.memory_space<vmem>>, vector<2x16x128xf32>
    %9 = vector.shape_cast %8 : vector<2x16x128xf32> to vector<32x128xf32>
    %c0_14 = arith.constant 0 : index
    %c2 = arith.constant 2 : index
    %c0_15 = arith.constant 0 : index
    %10 = vector.load %arg7[%c0_14, %c2, %c0_15] : memref<2x18x128xf32, #tpu.memory_space<vmem>>, vector<2x16x128xf32>
    %11 = vector.shape_cast %10 : vector<2x16x128xf32> to vector<32x128xf32>
    %12 = tpu.concatenate %7, %9, %11 in 1 : vector<32x128xf32>, vector<32x128xf32>, vector<32x128xf32> -> vector<32x384xf32>
    %c0_16 = arith.constant 0 : index
    %c0_17 = arith.constant 0 : index
    %13 = vector.load %arg1[%c0_16, %c0_17] : memref<384x128xf32, #tpu.memory_space<vmem>>, vector<384x128xf32>
    %cst_18 = arith.constant dense<0.000000e+00> : vector<32x128xf32>
    %14 = tpu.matmul %12, %13, %cst_18 {dimension_numbers = #tpu.dot_dimension_numbers<[1], [0], [0], [1], [0, 0, 1, 1], [], []>} : vector<32x384xf32>, vector<384x128xf32>, vector<32x128xf32> -> vector<32x128xf32>
    %cst_19 = arith.constant 0.000000e+00 : f32
    %15 = vector.broadcast %cst_19 : f32 to vector<32x128xf32>
    %16 = arith.maximumf %14, %15 : vector<32x128xf32>
    %c0_20 = arith.constant 0 : index
    %c0_21 = arith.constant 0 : index
    %17 = vector.load %arg4[%c0_20, %c0_21] : memref<2x128xf32, #tpu.memory_space<vmem>>, vector<2x128xf32>
    %cst_22 = arith.constant dense<0.000000e+00> : vector<128xf32>
    %18 = vector.multi_reduction <add>, %16, %cst_22 [0] : vector<32x128xf32> to vector<128xf32>
    %19 = vector.shape_cast %18 : vector<128xf32> to vector<1x128xf32>
    %20 = arith.mulf %16, %16 : vector<32x128xf32>
    %cst_23 = arith.constant dense<0.000000e+00> : vector<128xf32>
    %21 = vector.multi_reduction <add>, %20, %cst_23 [0] : vector<32x128xf32> to vector<128xf32>
    %22 = vector.shape_cast %21 : vector<128xf32> to vector<1x128xf32>
    %23 = tpu.concatenate %19, %22 in 0 : vector<1x128xf32>, vector<1x128xf32> -> vector<2x128xf32>
    %cst_24 = arith.constant dense<0.000000e+00> : vector<2x128xf32>
    %24 = tpu.matmul %23, %0, %cst_24 {dimension_numbers = #tpu.dot_dimension_numbers<[1], [0], [0], [1], [0, 0, 1, 1], [], []>} : vector<2x128xf32>, vector<128x128xf32>, vector<2x128xf32> -> vector<2x128xf32>
    %25 = vector.extract_strided_slice %24 {offsets = [0, 0], sizes = [1, 128], strides = [1, 1]} : vector<2x128xf32> to vector<1x128xf32>
    %cst_25 = arith.constant 0.001953125 : f32
    %26 = vector.broadcast %cst_25 : f32 to vector<1x128xf32>
    %27 = arith.mulf %25, %26 : vector<1x128xf32>
    %28 = vector.extract_strided_slice %24 {offsets = [1, 0], sizes = [1, 128], strides = [1, 1]} : vector<2x128xf32> to vector<1x128xf32>
    %cst_26 = arith.constant 0.001953125 : f32
    %29 = vector.broadcast %cst_26 : f32 to vector<1x128xf32>
    %30 = arith.mulf %28, %29 : vector<1x128xf32>
    %31 = arith.mulf %27, %27 : vector<1x128xf32>
    %32 = arith.subf %30, %31 : vector<1x128xf32>
    %33 = vector.extract_strided_slice %17 {offsets = [0, 0], sizes = [1, 128], strides = [1, 1]} : vector<2x128xf32> to vector<1x128xf32>
    %cst_27 = arith.constant 9.99999974E-6 : f32
    %34 = vector.broadcast %cst_27 : f32 to vector<1x128xf32>
    %35 = arith.addf %32, %34 : vector<1x128xf32>
    %36 = math.rsqrt %35 : vector<1x128xf32>
    %37 = arith.mulf %33, %36 : vector<1x128xf32>
    %38 = vector.extract_strided_slice %17 {offsets = [1, 0], sizes = [1, 128], strides = [1, 1]} : vector<2x128xf32> to vector<1x128xf32>
    %39 = arith.mulf %27, %37 : vector<1x128xf32>
    %40 = arith.subf %38, %39 : vector<1x128xf32>
    %41 = vector.broadcast %37 : vector<1x128xf32> to vector<32x128xf32>
    %42 = arith.mulf %16, %41 : vector<32x128xf32>
    %43 = vector.broadcast %40 : vector<1x128xf32> to vector<32x128xf32>
    %44 = arith.addf %42, %43 : vector<32x128xf32>
    %45 = vector.shape_cast %44 : vector<32x128xf32> to vector<2x16x128xf32>
    %c0_28 = arith.constant 0 : index
    %c1_29 = arith.constant 1 : index
    %c0_30 = arith.constant 0 : index
    %46 = vector.load %arg7[%c0_28, %c1_29, %c0_30] : memref<2x18x128xf32, #tpu.memory_space<vmem>>, vector<2x16x128xf32>
    tpu.vector_store %arg7[%c0_28, %c1_29, %c0_30], %45 {strides = array<i32>} : memref<2x18x128xf32, #tpu.memory_space<vmem>>, vector<2x16x128xf32>,
    %c0_31 = arith.constant 0 : index
    %c0_32 = arith.constant 0 : index
    %c0_33 = arith.constant 0 : index
    %47 = vector.load %arg7[%c0_31, %c0_32, %c0_33] : memref<2x18x128xf32, #tpu.memory_space<vmem>>, vector<2x16x128xf32>
    %48 = vector.shape_cast %47 : vector<2x16x128xf32> to vector<32x128xf32>
    %c0_34 = arith.constant 0 : index
    %c1_35 = arith.constant 1 : index
    %c0_36 = arith.constant 0 : index
    %49 = vector.load %arg7[%c0_34, %c1_35, %c0_36] : memref<2x18x128xf32, #tpu.memory_space<vmem>>, vector<2x16x128xf32>
    %50 = vector.shape_cast %49 : vector<2x16x128xf32> to vector<32x128xf32>
    %c0_37 = arith.constant 0 : index
    %c2_38 = arith.constant 2 : index
    %c0_39 = arith.constant 0 : index
    %51 = vector.load %arg7[%c0_37, %c2_38, %c0_39] : memref<2x18x128xf32, #tpu.memory_space<vmem>>, vector<2x16x128xf32>
    %52 = vector.shape_cast %51 : vector<2x16x128xf32> to vector<32x128xf32>
    %53 = tpu.concatenate %48, %50, %52 in 1 : vector<32x128xf32>, vector<32x128xf32>, vector<32x128xf32> -> vector<32x384xf32>
    %c0_40 = arith.constant 0 : index
    %c0_41 = arith.constant 0 : index
    %54 = vector.load %arg2[%c0_40, %c0_41] : memref<384x128xf32, #tpu.memory_space<vmem>>, vector<384x128xf32>
    %cst_42 = arith.constant dense<0.000000e+00> : vector<32x128xf32>
    %55 = tpu.matmul %53, %54, %cst_42 {dimension_numbers = #tpu.dot_dimension_numbers<[1], [0], [0], [1], [0, 0, 1, 1], [], []>} : vector<32x384xf32>, vector<384x128xf32>, vector<32x128xf32> -> vector<32x128xf32>
    %cst_43 = arith.constant 0.000000e+00 : f32
    %56 = vector.broadcast %cst_43 : f32 to vector<32x128xf32>
    %57 = arith.maximumf %55, %56 : vector<32x128xf32>
    %c0_44 = arith.constant 0 : index
    %c0_45 = arith.constant 0 : index
    %58 = vector.load %arg5[%c0_44, %c0_45] : memref<2x128xf32, #tpu.memory_space<vmem>>, vector<2x128xf32>
    %cst_46 = arith.constant dense<0.000000e+00> : vector<128xf32>
    %59 = vector.multi_reduction <add>, %57, %cst_46 [0] : vector<32x128xf32> to vector<128xf32>
    %60 = vector.shape_cast %59 : vector<128xf32> to vector<1x128xf32>
    %61 = arith.mulf %57, %57 : vector<32x128xf32>
    %cst_47 = arith.constant dense<0.000000e+00> : vector<128xf32>
    %62 = vector.multi_reduction <add>, %61, %cst_47 [0] : vector<32x128xf32> to vector<128xf32>
    %63 = vector.shape_cast %62 : vector<128xf32> to vector<1x128xf32>
    %64 = tpu.concatenate %60, %63 in 0 : vector<1x128xf32>, vector<1x128xf32> -> vector<2x128xf32>
    %cst_48 = arith.constant dense<0.000000e+00> : vector<2x128xf32>
    %65 = tpu.matmul %64, %0, %cst_48 {dimension_numbers = #tpu.dot_dimension_numbers<[1], [0], [0], [1], [0, 0, 1, 1], [], []>} : vector<2x128xf32>, vector<128x128xf32>, vector<2x128xf32> -> vector<2x128xf32>
    %66 = vector.extract_strided_slice %65 {offsets = [0, 0], sizes = [1, 128], strides = [1, 1]} : vector<2x128xf32> to vector<1x128xf32>
    %cst_49 = arith.constant 0.001953125 : f32
    %67 = vector.broadcast %cst_49 : f32 to vector<1x128xf32>
    %68 = arith.mulf %66, %67 : vector<1x128xf32>
    %69 = vector.extract_strided_slice %65 {offsets = [1, 0], sizes = [1, 128], strides = [1, 1]} : vector<2x128xf32> to vector<1x128xf32>
    %cst_50 = arith.constant 0.001953125 : f32
    %70 = vector.broadcast %cst_50 : f32 to vector<1x128xf32>
    %71 = arith.mulf %69, %70 : vector<1x128xf32>
    %72 = arith.mulf %68, %68 : vector<1x128xf32>
    %73 = arith.subf %71, %72 : vector<1x128xf32>
    %74 = vector.extract_strided_slice %58 {offsets = [0, 0], sizes = [1, 128], strides = [1, 1]} : vector<2x128xf32> to vector<1x128xf32>
    %cst_51 = arith.constant 9.99999974E-6 : f32
    %75 = vector.broadcast %cst_51 : f32 to vector<1x128xf32>
    %76 = arith.addf %73, %75 : vector<1x128xf32>
    %77 = math.rsqrt %76 : vector<1x128xf32>
    %78 = arith.mulf %74, %77 : vector<1x128xf32>
    %79 = vector.extract_strided_slice %58 {offsets = [1, 0], sizes = [1, 128], strides = [1, 1]} : vector<2x128xf32> to vector<1x128xf32>
    %80 = arith.mulf %68, %78 : vector<1x128xf32>
    %81 = arith.subf %79, %80 : vector<1x128xf32>
    %82 = vector.broadcast %78 : vector<1x128xf32> to vector<32x128xf32>
    %83 = arith.mulf %57, %82 : vector<32x128xf32>
    %84 = vector.broadcast %81 : vector<1x128xf32> to vector<32x128xf32>
    %85 = arith.addf %83, %84 : vector<32x128xf32>
    %86 = arith.addf %85, %3 : vector<32x128xf32>
    %c0_52 = arith.constant 0 : index
    %c0_53 = arith.constant 0 : index
    %87 = vector.load %arg6[%c0_52, %c0_53] : memref<32x128xf32, #tpu.memory_space<vmem>>, vector<32x128xf32>
    tpu.vector_store %arg6[%c0_52, %c0_53], %86 {strides = array<i32>} : memref<32x128xf32, #tpu.memory_space<vmem>>, vector<32x128xf32>,
    return
  }
}

</mosaic_0001>

<bundles_post_ra>
// kernel: tile.23
= control target key start
LH: loop header
LB: loop body
LE: loop exit
PB: predicated region body
PF: predicated region fallthrough
CT: control target
= control target key end

     0   :  { %s28_s0 = inlined_call_operand.vmem [shape: f32[8], index: 0, kind: input, shape index: {}]   ;;  %s29_s1 = inlined_call_operand.vmem [shape: f32[16,8], index: 1, kind: output, shape index: {}]  }
   0x1   :  { %v4_v0 = vld [vmem:[%s28_s0] ss:$0 sm:$0xff] }
   0x2   :  { %5 = vst [vmem:[%s29_s1] sm:$0xff] %v4_v0  ;;  %8 = vst [vmem:[%s29_s1 + $0x8] sm:$0xff] %v4_v0 }

// kernel: tile.28
= control target key start
LH: loop header
LB: loop body
LE: loop exit
PB: predicated region body
PF: predicated region fallthrough
CT: control target
= control target key end

     0   :  { %s133_s10 = smov 120   ;;  %s134_s11 = smov 104   ;;  %vm3_vm0 = vcmask 64512   ;;  %vm9_vm1 = vcmask 1048512   ;;  %vm15_vm2 = vcmask 982912   ;;  %vm21_vm3 = vcmask 917312   ;;  %s209_s0 = inlined_call_operand.vmem [shape: f32[16,8], index: 0, kind: input, shape index: {}]   ;;  %s210_s1 = inlined_call_operand.vmem [shape: f32[1,128], index: 1, kind: output, shape index: {}]  }
   0x1   :  { %v103_v0 = vld [vmem:[%s209_s0 + $0xf] sm:$0x1]   ;;  %v105_v1 = vld [vmem:[%s209_s0 + $0xd] sm:$0x1]   ;;  %v104_v2 = vld [vmem:[%s209_s0 + $0xe] sm:$0x1]  }
   0x2   :  { %7 = vrot.lane.b32.xlu0 %v103_v0, %s133_s10  ;;  %19 = vrot.lane.b32.xlu1 %v105_v1, %s134_s11  ;;  %v106_v3 = vld [vmem:[%s209_s0 + $0xc] sm:$0x1]   ;;  %s135_s16 = smov 112   ;;  %s136_s17 = smov 96   ;;  %v107_v4 = vld [vmem:[%s209_s0 + $0xb] sm:$0x1]  }
   0x3   :  { %v108_v5 = vld [vmem:[%s209_s0 + $0xa] sm:$0x1]   ;;  %v2_v6 = vld [vmem:[%s209_s0] sm:$0x1]   ;;  %s137_s24 = smov 88   ;;  %s138_s25 = smov 80  }
   0x4   :  { %4 = vst.msk [vmem:[#allocation0] sm:$0x1] %vm3_vm0, %v2_v6   ;;  %v109_v7 = vld [vmem:[%s209_s0 + $0x9] sm:$0x1]   ;;  %v110_v8 = vld [vmem:[%s209_s0 + $0x8] sm:$0x1]  }
   0x5   :  { %s139_s30 = smov 72   ;;  %s140_s2 = smov 64   ;;  %v111_v9 = vld [vmem:[%s209_s0 + $0x7] sm:$0x1]   ;;  %v112_v10 = vld [vmem:[%s209_s0 + $0x6] sm:$0x1]  }
   0x6   :  { %13 = vrot.lane.b32.xlu0 %v104_v2, %s135_s16  ;;  %25 = vrot.lane.b32.xlu1 %v106_v3, %s136_s17  ;;  %s141_s7 = smov 56   ;;  %s142_s8 = smov 48   ;;  %v113_v11 = vld [vmem:[%s209_s0 + $0x5] sm:$0x1]   ;;  %v114_v12 = vld [vmem:[%s209_s0 + $0x4] sm:$0x1]  }
   0x7   :  { %s143_s13 = smov 40   ;;  %s144_s14 = smov 32   ;;  %v115_v13 = vld [vmem:[%s209_s0 + $0x3] sm:$0x1]   ;;  %v116_v14 = vld [vmem:[%s209_s0 + $0x2] sm:$0x1]  }
   0x8   :  { %s145_s19 = smov 24   ;;  %s146_s20 = smov 16   ;;  %v117_v15 = vld [vmem:[%s209_s0 + $0x1] sm:$0x1]   ;;  %vm27_vm4 = vcmask 851712   ;;  %vm33_vm5 = vcmask 786112  }
   0x9   :  { %s147_s0 = smov 8   ;;  %vm39_vm6 = vcmask 720512   ;;  %vm45_vm7 = vcmask 654912   ;;  %vm51_vm8 = vcmask 589312   ;;  %vm57_vm9 = vcmask 523712  }
   0xa   :  { %31 = vrot.lane.b32.xlu0 %v107_v4, %s137_s24  ;;  %37 = vrot.lane.b32.xlu1 %v108_v5, %s138_s25  ;;  %vm63_vm10 = vcmask 458112   ;;  %vm69_vm11 = vcmask 392512   ;;  %vm75_vm12 = vcmask 326912   ;;  %vm81_vm13 = vcmask 261312  }
   0xb   :  { %vm87_vm14 = vcmask 195712   ;;  %vm93_vm15 = vcmask 130112  }
   0xe   :  { %43 = vrot.lane.b32.xlu0 %v109_v7, %s139_s30  ;;  %49 = vrot.lane.b32.xlu1 %v110_v8, %s140_s2 }
  0x12   :  { %55 = vrot.lane.b32.xlu0 %v111_v9, %s141_s7  ;;  %61 = vrot.lane.b32.xlu1 %v112_v10, %s142_s8 }
  0x16   :  { %67 = vrot.lane.b32.xlu0 %v113_v11, %s143_s13  ;;  %73 = vrot.lane.b32.xlu1 %v114_v12, %s144_s14 }
  0x1a   :  { %79 = vrot.lane.b32.xlu0 %v115_v13, %s145_s19  ;;  %85 = vrot.lane.b32.xlu1 %v116_v14, %s146_s20 }
  0x1e   :  { %91 = vrot.lane.b32.xlu0 %v117_v15, %s147_s0 }
  0x74   :  { %v8_v16 = vpop.permute.xlu0 %7   ;;  %v20_v17 = vpop.permute.xlu1 %19  }
  0x75   :  { %10 = vst.msk [vmem:[#allocation0] sm:$0x1] %vm9_vm1, %v8_v16  }
  0x78   :  { %v14_v18 = vpop.permute.xlu0 %13   ;;  %v26_v19 = vpop.permute.xlu1 %25  }
  0x79   :  { %16 = vst.msk [vmem:[#allocation0] sm:$0x1] %vm15_vm2, %v14_v18  }
  0x7a   :  { %22 = vst.msk [vmem:[#allocation0] sm:$0x1] %vm21_vm3, %v20_v17  }
  0x7b   :  { %28 = vst.msk [vmem:[#allocation0] sm:$0x1] %vm27_vm4, %v26_v19  }
  0x7c   :  { %v32_v20 = vpop.permute.xlu0 %31   ;;  %v38_v21 = vpop.permute.xlu1 %37  }
  0x7d   :  { %34 = vst.msk [vmem:[#allocation0] sm:$0x1] %vm33_vm5, %v32_v20  }
  0x7e   :  { %40 = vst.msk [vmem:[#allocation0] sm:$0x1] %vm39_vm6, %v38_v21  }
  0x80   :  { %v44_v22 = vpop.permute.xlu0 %43   ;;  %v50_v23 = vpop.permute.xlu1 %49  }
  0x81   :  { %46 = vst.msk [vmem:[#allocation0] sm:$0x1] %vm45_vm7, %v44_v22  }
  0x82   :  { %52 = vst.msk [vmem:[#allocation0] sm:$0x1] %vm51_vm8, %v50_v23  }
  0x84   :  { %v56_v24 = vpop.permute.xlu0 %55   ;;  %v62_v25 = vpop.permute.xlu1 %61  }
  0x85   :  { %58 = vst.msk [vmem:[#allocation0] sm:$0x1] %vm57_vm9, %v56_v24  }
  0x86   :  { %64 = vst.msk [vmem:[#allocation0] sm:$0x1] %vm63_vm10, %v62_v25  }
  0x88   :  { %v68_v26 = vpop.permute.xlu0 %67   ;;  %v74_v27 = vpop.permute.xlu1 %73  }
  0x89   :  { %70 = vst.msk [vmem:[#allocation0] sm:$0x1] %vm69_vm11, %v68_v26  }
  0x8a   :  { %76 = vst.msk [vmem:[#allocation0] sm:$0x1] %vm75_vm12, %v74_v27  }
  0x8c   :  { %v80_v28 = vpop.permute.xlu0 %79   ;;  %v86_v29 = vpop.permute.xlu1 %85  }
  0x8d   :  { %82 = vst.msk [vmem:[#allocation0] sm:$0x1] %vm81_vm13, %v80_v28  }
  0x8e   :  { %88 = vst.msk [vmem:[#allocation0] sm:$0x1] %vm87_vm14, %v86_v29  }
  0x90   :  { %v92_v30 = vpop.permute.xlu0 %91  }
  0x91   :  { %94 = vst.msk [vmem:[#allocation0] sm:$0x1] %vm93_vm15, %v92_v30  }
  0x98   :  { %v99_v31 = vld [vmem:[#allocation0] sm:$0x1] }
  0x99   :  { %102 = vst [vmem:[%s210_s1] sm:$0x1] %v99_v31 }

// kernel: resnet_block_forward.1
= control target key start
LH: loop header
LB: loop body
LE: loop exit
PB: predicated region body
PF: predicated region fallthrough
CT: control target
= control target key end

     0   :  { %v1106_v3 = vmov 0.0   ;;  %vm1107_vm0 = vmmov 0   ;;  %vm310_vm1 = vcmask 1040384   ;;  %s1673_s1 = inlined_call_operand.vmem [shape: f32[384,128], index: 1, kind: input, shape index: {}]   ;;  %s1674_s0 = inlined_call_operand.vmem [shape: f32[32,128], index: 0, kind: input, shape index: {}]   ;;  %s1675_s3 = inlined_call_operand.vmem [shape: f32[128,128], index: 3, kind: input, shape index: {}]   ;;  %s1676_s2 = inlined_call_operand.vmem [shape: f32[384,128], index: 2, kind: input, shape index: {}]   ;;  %s1677_s4 = inlined_call_operand.vmem [shape: f32[2,128], index: 4, kind: input, shape index: {}]   ;;  %s1678_s5 = inlined_call_operand.vmem [shape: f32[2,128], index: 5, kind: input, shape index: {}]   ;;  %s1679_s6 = inlined_call_operand.vmem [shape: f32[32,128], index: 6, kind: output, shape index: {}]  }
   0x1   :  { %v96_v0 = vld [vmem:[%s1673_s1 + $0xf8] sm:$0xff]  ;;  %v95_v2 = vld [vmem:[%s1673_s1 + $0xf0] sm:$0xff]  ;;  %39 = vst [vmem:[#allocation2] sm:$0xff] %v1106_v3  ;;  %40 = vst [vmem:[#allocation2 + $0x8] sm:$0xff] %v1106_v3 }
   0x2   :  { %v80_v1 = vld [vmem:[%s1673_s1 + $0x78] sm:$0xff]  ;;  %41 = vst [vmem:[#allocation2 + $0x10] sm:$0x3] %v1106_v3  ;;  %42 = vst [vmem:[#allocation2 + $0x18] sm:$0xff] %v1106_v3  ;;  %792 = vmatprep.subr.mxu0 %v96_v0  ;;  %v79_v5 = vld [vmem:[%s1673_s1 + $0x70] sm:$0xff] }
   0x3   :  { %43 = vst [vmem:[#allocation2 + $0x20] sm:$0xff] %v1106_v3  ;;  %44 = vst [vmem:[#allocation2 + $0x28] sm:$0x3] %v1106_v3  ;;  %v112_v4 = vld [vmem:[%s1673_s1 + $0x178] sm:$0xff]  ;;  %793 = vmatpush3.msra.mxu0 %v80_v1  ;;  %v94_v6 = vld [vmem:[%s1673_s1 + $0xe8] sm:$0xff] }
   0x4   :  { %954 = vmatprep.subr.mxu1 %v112_v4  ;;  %v111_v7 = vld [vmem:[%s1673_s1 + $0x170] sm:$0xff]  ;;  %794 = vmatprep.subr.mxu0 %v95_v2  ;;  %v78_v8 = vld [vmem:[%s1673_s1 + $0x68] sm:$0xff]  ;;  %v93_v10 = vld [vmem:[%s1673_s1 + $0xe0] sm:$0xff] }
   0x5   :  { %955 = vmatpush3.msra.mxu1 %v112_v4  ;;  %v110_v9 = vld [vmem:[%s1673_s1 + $0x168] sm:$0xff]  ;;  %795 = vmatpush3.msra.mxu0 %v79_v5  ;;  %v77_v11 = vld [vmem:[%s1673_s1 + $0x60] sm:$0xff]  ;;  %v92_v13 = vld [vmem:[%s1673_s1 + $0xd8] sm:$0xff] }
   0x6   :  { %956 = vmatprep.subr.mxu1 %v111_v7  ;;  %796 = vmatprep.subr.mxu0 %v94_v6  ;;  %v109_v12 = vld [vmem:[%s1673_s1 + $0x160] sm:$0xff]  ;;  %v76_v14 = vld [vmem:[%s1673_s1 + $0x58] sm:$0xff]  ;;  %v91_v16 = vld [vmem:[%s1673_s1 + $0xd0] sm:$0xff] }
   0x7   :  { %957 = vmatpush3.msra.mxu1 %v111_v7  ;;  %797 = vmatpush3.msra.mxu0 %v78_v8  ;;  %v108_v15 = vld [vmem:[%s1673_s1 + $0x158] sm:$0xff]  ;;  %v75_v17 = vld [vmem:[%s1673_s1 + $0x50] sm:$0xff]  ;;  %v90_v19 = vld [vmem:[%s1673_s1 + $0xc8] sm:$0xff] }
   0x8   :  { %958 = vmatprep.subr.mxu1 %v110_v9  ;;  %798 = vmatprep.subr.mxu0 %v93_v10  ;;  %v107_v18 = vld [vmem:[%s1673_s1 + $0x150] sm:$0xff]  ;;  %v74_v20 = vld [vmem:[%s1673_s1 + $0x48] sm:$0xff]  ;;  %v89_v22 = vld [vmem:[%s1673_s1 + $0xc0] sm:$0xff] }
   0x9   :  { %959 = vmatpush3.msra.mxu1 %v110_v9  ;;  %799 = vmatpush3.msra.mxu0 %v77_v11  ;;  %v106_v21 = vld [vmem:[%s1673_s1 + $0x148] sm:$0xff]  ;;  %v73_v23 = vld [vmem:[%s1673_s1 + $0x40] sm:$0xff]  ;;  %v88_v25 = vld [vmem:[%s1673_s1 + $0xb8] sm:$0xff] }
   0xa   :  { %960 = vmatprep.subr.mxu1 %v109_v12  ;;  %800 = vmatprep.subr.mxu0 %v92_v13  ;;  %v105_v24 = vld [vmem:[%s1673_s1 + $0x140] sm:$0xff]  ;;  %v72_v26 = vld [vmem:[%s1673_s1 + $0x38] sm:$0xff]  ;;  %v87_v29 = vld [vmem:[%s1673_s1 + $0xb0] sm:$0xff] }
   0xb   :  { %961 = vmatpush3.msra.mxu1 %v109_v12  ;;  %801 = vmatpush3.msra.mxu0 %v76_v14  ;;  %v104_v27 = vld [vmem:[%s1673_s1 + $0x138] sm:$0xff]  ;;  %v1233_v28 = vld [vmem:[%s1674_s0] sm:$0xff]  ;;  %v1242_v30 = vld [vmem:[%s1674_s0 + $0x8] sm:$0xff] }
   0xc   :  { %962 = vmatprep.subr.mxu1 %v108_v15  ;;  %802 = vmatprep.subr.mxu0 %v91_v16  ;;  %49 = vst [vmem:[#allocation2 + $0x1] sm:$0xff] %v1233_v28  ;;  %v1247_v31 = vld [vmem:[%s1674_s0 + $0x10] sm:$0xff]  ;;  %50 = vst [vmem:[#allocation2 + $0x9] sm:$0xff] %v1242_v30  ;;  %v1260_v34 = vld [vmem:[%s1674_s0 + $0x18] sm:$0xff] }
   0xd   :  { %963 = vmatpush3.msra.mxu1 %v108_v15  ;;  %803 = vmatpush3.msra.mxu0 %v75_v17  ;;  %v71_v32 = vld [vmem:[%s1673_s1 + $0x30] sm:$0xff]  ;;  %51 = vst [vmem:[#allocation2 + $0x19] sm:$0xff] %v1247_v31  ;;  %v86_v35 = vld [vmem:[%s1673_s1 + $0xa8] sm:$0xff]  ;;  %52 = vst [vmem:[#allocation2 + $0x21] sm:$0xff] %v1260_v34 }
   0xe   :  { %964 = vmatprep.subr.mxu1 %v107_v18  ;;  %804 = vmatprep.subr.mxu0 %v90_v19  ;;  %v103_v33 = vld [vmem:[%s1673_s1 + $0x130] sm:$0xff]  ;;  %v70_v36 = vld [vmem:[%s1673_s1 + $0x28] sm:$0xff]  ;;  %v85_v38 = vld [vmem:[%s1673_s1 + $0xa0] sm:$0xff] }
   0xf   :  { %965 = vmatpush3.msra.mxu1 %v107_v18  ;;  %805 = vmatpush3.msra.mxu0 %v74_v20  ;;  %v102_v37 = vld [vmem:[%s1673_s1 + $0x128] sm:$0xff]  ;;  %v69_v39 = vld [vmem:[%s1673_s1 + $0x20] sm:$0xff]  ;;  %v84_v41 = vld [vmem:[%s1673_s1 + $0x98] sm:$0xff] }
  0x10   :  { %966 = vmatprep.subr.mxu1 %v106_v21  ;;  %806 = vmatprep.subr.mxu0 %v89_v22  ;;  %v101_v40 = vld [vmem:[%s1673_s1 + $0x120] sm:$0xff]  ;;  %v68_v42 = vld [vmem:[%s1673_s1 + $0x18] sm:$0xff]  ;;  %v83_v44 = vld [vmem:[%s1673_s1 + $0x90] sm:$0xff] }
  0x11   :  { %967 = vmatpush3.msra.mxu1 %v106_v21  ;;  %807 = vmatpush3.msra.mxu0 %v73_v23  ;;  %v100_v43 = vld [vmem:[%s1673_s1 + $0x118] sm:$0xff]  ;;  %v67_v45 = vld [vmem:[%s1673_s1 + $0x10] sm:$0xff]  ;;  %v82_v47 = vld [vmem:[%s1673_s1 + $0x88] sm:$0xff] }
  0x12   :  { %968 = vmatprep.subr.mxu1 %v105_v24  ;;  %808 = vmatprep.subr.mxu0 %v88_v25  ;;  %v99_v46 = vld [vmem:[%s1673_s1 + $0x110] sm:$0xff]  ;;  %v66_v48 = vld [vmem:[%s1673_s1 + $0x8] sm:$0xff]  ;;  %v81_v50 = vld [vmem:[%s1673_s1 + $0x80] sm:$0xff] }
  0x13   :  { %969 = vmatpush3.msra.mxu1 %v105_v24  ;;  %809 = vmatpush3.msra.mxu0 %v72_v26  ;;  %v98_v49 = vld [vmem:[%s1673_s1 + $0x108] sm:$0xff]  ;;  %v65_v51 = vld [vmem:[%s1673_s1] sm:$0xff]  ;;  %v1325_v61 = vld [vmem:[%s1675_s3 + $0x78] sm:$0xff] }
  0x14   :  { %970 = vmatprep.subr.mxu1 %v104_v27  ;;  %810 = vmatprep.subr.mxu0 %v87_v29  ;;  %v53_v52 = vld [vmem:[#allocation2] sm:$0xff]  ;;  %v62_v55 = vld [vmem:[#allocation2 + $0xa] sm:$0xff]  ;;  %v55_v59 = vld [vmem:[#allocation2 + $0x18] sm:$0xff] }
  0x15   :  { %971 = vmatpush3.msra.mxu1 %v104_v27  ;;  %811 = vmatpush3.msra.mxu0 %v71_v32  ;;  %v97_v53 = vld [vmem:[%s1673_s1 + $0x100] sm:$0xff]  ;;  %v54_v57 = vld [vmem:[#allocation2 + $0x8] sm:$0xff]  ;;  %v1332_v62 = vld [vmem:[%s1675_s3 + $0x70] sm:$0xff] }
  0x16   :  { %972 = vmatprep.subr.mxu1 %v103_v33  ;;  %812 = vmatprep.subr.mxu0 %v86_v35  ;;  %v61_v54 = vld [vmem:[#allocation2 + $0x2] sm:$0xff]  ;;  %v63_v56 = vld [vmem:[#allocation2 + $0x1a] sm:$0xff]  ;;  %v1360_v2 = vld [vmem:[%s1675_s3 + $0x50] sm:$0xff] }
  0x17   :  { %973 = vmatpush3.msra.mxu1 %v103_v33  ;;  %813 = vmatpush3.msra.mxu0 %v70_v36  ;;  %v64_v58 = vld [vmem:[#allocation2 + $0x22] sm:$0xff]  ;;  %v1353_v1 = vld [vmem:[%s1675_s3 + $0x58] sm:$0xff]  ;;  %v1388_v7 = vld [vmem:[%s1675_s3 + $0x30] sm:$0xff] }
  0x18   :  { %974 = vmatprep.subr.mxu1 %v102_v37  ;;  %814 = vmatprep.subr.mxu0 %v85_v38  ;;  %v56_v60 = vld [vmem:[#allocation2 + $0x20] sm:$0xff]  ;;  %v1339_v63 = vld [vmem:[%s1675_s3 + $0x68] sm:$0xff]  ;;  %v1381_v6 = vld [vmem:[%s1675_s3 + $0x38] sm:$0xff] }
  0x19   :  { %975 = vmatpush3.msra.mxu1 %v102_v37  ;;  %815 = vmatpush3.msra.mxu0 %v69_v39  ;;  %v1346_v0 = vld [vmem:[%s1675_s3 + $0x60] sm:$0xff]  ;;  %v1367_v4 = vld [vmem:[%s1675_s3 + $0x48] sm:$0xff]  ;;  %v1408_v10 = vld [vmem:[%s1675_s3 + $0x18] sm:$0xff] }
  0x1a   :  { %976 = vmatprep.subr.mxu1 %v101_v40  ;;  %816 = vmatprep.subr.mxu0 %v84_v41  ;;  %v1374_v5 = vld [vmem:[%s1675_s3 + $0x40] sm:$0xff]  ;;  %v1395_v8 = vld [vmem:[%s1675_s3 + $0x28] sm:$0xff]  ;;  %v1414_v11 = vld [vmem:[%s1675_s3 + $0x10] sm:$0xff] }
  0x1b   :  { %977 = vmatpush3.msra.mxu1 %v101_v40  ;;  %817 = vmatpush3.msra.mxu0 %v68_v42  ;;  %v1402_v9 = vld [vmem:[%s1675_s3 + $0x20] sm:$0xff]  ;;  %v1423_v12 = vld [vmem:[%s1675_s3 + $0x8] sm:$0xff] }
  0x1c   :  { %978 = vmatprep.subr.mxu1 %v100_v43  ;;  %818 = vmatprep.subr.mxu0 %v83_v44  ;;  %v1430_v13 = vld [vmem:[%s1675_s3] sm:$0xff] }
  0x1d   :  { %979 = vmatpush3.msra.mxu1 %v100_v43  ;;  %819 = vmatpush3.msra.mxu0 %v67_v45 }
  0x1e   :  { %980 = vmatprep.subr.mxu1 %v99_v46  ;;  %820 = vmatprep.subr.mxu0 %v82_v47 }
  0x1f   :  { %981 = vmatpush3.msra.mxu1 %v99_v46  ;;  %821 = vmatpush3.msra.mxu0 %v66_v48 }
  0x20   :  { %982 = vmatprep.subr.mxu1 %v98_v49  ;;  %822 = vmatprep.subr.mxu0 %v81_v50 }
  0x21   :  { %177 = vmatprep.mubr.f32.mxu0 %v1233_v28  ;;  %823 = vmatpush3.msra.mxu0 %v65_v51 }
  0x22   :  { %983 = vmatpush3.msra.mxu1 %v98_v49  ;;  %178 = vmatmul.mubr.f32.vlgmr.msra.gmra.mxu0 %v53_v52 }
  0x23   :  { %984 = vmatprep.subr.mxu1 %v97_v53  ;;  %986 = vmatprep.mubr.f32.mxu1 %v61_v54 }
  0x24   :  { %985 = vmatpush3.msra.mxu1 %v97_v53  ;;  %182 = vmatprep.mubr.f32.mxu0 %v1242_v30 }
  0x25   :  { %987 = vmatmul.mubr.f32.vlgmr.msra.gmra.mxu1 %v62_v55  ;;  %992 = vmatprep.subr.mxu0 %v1106_v3 }
  0x26   :  { %989 = vmatprep.mubr.f32.mxu1 %v63_v56  ;;  %183 = vmatmul.mubr.f32.gmra.mxu0 %v54_v57 }
  0x27   :  { %187 = vmatprep.mubr.f32.mxu0 %v1247_v31  ;;  %993 = vmatpush3.msra.mxu0 %v1325_v61 }
  0x28   :  { %994 = vmatprep.subr.mxu0 %v1106_v3 }
  0x29   :  { %990 = vmatmul.mubr.f32.gmra.mxu1 %v64_v58  ;;  %995 = vmatpush3.msra.mxu0 %v1332_v62 }
  0x2a   :  { %188 = vmatmul.mubr.f32.gmra.mxu0 %v55_v59  ;;  %996 = vmatprep.subr.mxu0 %v1106_v3 }
  0x2b   :  { %192 = vmatprep.mubr.f32.mxu0 %v1260_v34  ;;  %997 = vmatpush3.msra.mxu0 %v1339_v63 }
  0x2c   :  { %998 = vmatprep.subr.mxu0 %v1106_v3 }
  0x2d   :  { %999 = vmatpush3.msra.mxu0 %v1346_v0 }
  0x2e   :  { %193 = vmatmul.mubr.f32.gmra.mxu0 %v56_v60  ;;  %1000 = vmatprep.subr.mxu0 %v1106_v3 }
  0x2f   :  { %1001 = vmatpush3.msra.mxu0 %v1353_v1  ;;  %1024 = vmatprep.mubr.msk.f32.mxu0 %vm1107_vm0, %v1106_v3 }
  0x30   :  { %1002 = vmatprep.subr.mxu0 %v1106_v3 }
  0x31   :  { %1003 = vmatpush3.msra.mxu0 %v1360_v2 }
  0x32   :  { %1004 = vmatprep.subr.mxu0 %v1106_v3 }
  0x33   :  { %1005 = vmatpush3.msra.mxu0 %v1367_v4 }
  0x34   :  { %1006 = vmatprep.subr.mxu0 %v1106_v3 }
  0x35   :  { %1007 = vmatpush3.msra.mxu0 %v1374_v5 }
  0x36   :  { %1008 = vmatprep.subr.mxu0 %v1106_v3 }
  0x37   :  { %1009 = vmatpush3.msra.mxu0 %v1381_v6 }
  0x38   :  { %1010 = vmatprep.subr.mxu0 %v1106_v3 }
  0x39   :  { %1011 = vmatpush3.msra.mxu0 %v1388_v7 }
  0x3a   :  { %1012 = vmatprep.subr.mxu0 %v1106_v3 }
  0x3b   :  { %1013 = vmatpush3.msra.mxu0 %v1395_v8 }
  0x3c   :  { %1014 = vmatprep.subr.mxu0 %v1106_v3 }
  0x3d   :  { %1015 = vmatpush3.msra.mxu0 %v1402_v9 }
  0x3e   :  { %1016 = vmatprep.subr.mxu0 %v1106_v3 }
  0x3f   :  { %1017 = vmatpush3.msra.mxu0 %v1408_v10 }
  0x40   :  { %1018 = vmatprep.subr.mxu0 %v1106_v3 }
  0x41   :  { %1019 = vmatpush3.msra.mxu0 %v1414_v11 }
  0x42   :  { %1020 = vmatprep.subr.mxu0 %v1106_v3 }
  0x43   :  { %1021 = vmatpush3.msra.mxu0 %v1423_v12 }
  0x44   :  { %1022 = vmatprep.subr.mxu0 %v1106_v3 }
  0x45   :  { %1023 = vmatpush3.msra.mxu0 %v1430_v13 }
  0xe2   :  { %v824_v14 = vpop.f32.mrf.mxu0 }
  0xe4   :  { %v825_v15 = vpop.f32.mrf.mxu0 }
  0xe5   :  { %v988_v16 = vpop.f32.mrf.mxu1  ;;  %v826_v19 = vadd.f32 %v825_v15, %v824_v14 }
  0xe6   :  { %v827_v17 = vpop.f32.mrf.mxu0 }
  0xe7   :  { %v264_v18 = vpop.f32.mrf.mxu1 }
  0xe8   :  { %v828_v20 = vpop.f32.mrf.mxu0  ;;  %v265_v24 = vadd.f32 %v826_v19, %v264_v18  ;;  %v462_v18 = vld [vmem:[%s1676_s2 + $0xf8] sm:$0xff] }
  0xe9   :  { %v991_v21 = vpop.f32.mrf.mxu1  ;;  %v829_v22 = vadd.f32 %v828_v20, %v827_v17  ;;  %873 = vmatprep.subr.mxu1 %v462_v18  ;;  %v478_v19 = vld [vmem:[%s1676_s2 + $0x178] sm:$0xff]  ;;  %v449_v18 = vld [vmem:[%s1676_s2 + $0x90] sm:$0xff] }
  0xea   :  { %v830_v23 = vpop.f32.mrf.mxu0  ;;  %v1437_v35 = vmax.f32 %v265_v24, 0.0  ;;  %v446_v20 = vld [vmem:[%s1676_s2 + $0x78] sm:$0xff]  ;;  %1027 = vmatprep.subr.mxu0 %v478_v19  ;;  %v460_v24 = vld [vmem:[%s1676_s2 + $0xe8] sm:$0xff] }
  0xeb   :  { %v270_v25 = vadd.f32 %v988_v16, %v829_v22  ;;  %v274_v27 = vpop.f32.mrf.mxu1  ;;  %874 = vmatpush3.msra.mxu1 %v446_v20  ;;  %v477_v22 = vld [vmem:[%s1676_s2 + $0x170] sm:$0xff] }
  0xec   :  { %v831_v26 = vpop.f32.mrf.mxu0  ;;  %v297_v41 = vmul.f32 %v1437_v35, %v1437_v35  ;;  %v433_v20 = vld [vmem:[%s1676_s2 + $0x10] sm:$0xff] }
  0xed   :  { %v1435_v29 = vmax.f32 %v270_v25, 0.0  ;;  %v832_v32 = vadd.f32 %v831_v26, %v830_v23  ;;  %v445_v23 = vld [vmem:[%s1676_s2 + $0x70] sm:$0xff]  ;;  %v476_v25 = vld [vmem:[%s1676_s2 + $0x168] sm:$0xff] }
  0xee   :  { %v833_v33 = vpop.f32.mrf.mxu0  ;;  %v444_v26 = vld [vmem:[%s1676_s2 + $0x68] sm:$0xff] }
  0xef   :  { %v275_v36 = vadd.f32 %v832_v32, %v274_v27  ;;  %v298_v38 = vmul.f32 %v1435_v29, %v1435_v29  ;;  %v288_v42 = vadd.f32 %v1435_v29, %v1437_v35  ;;  %v459_v27 = vld [vmem:[%s1676_s2 + $0xe0] sm:$0xff] }
  0xf0   :  { %v834_v37 = vpop.f32.mrf.mxu0  ;;  %v475_v32 = vld [vmem:[%s1676_s2 + $0x160] sm:$0xff] }
  0xf1   :  { %v1441_v39 = vmax.f32 %v275_v36, 0.0  ;;  %v835_v40 = vadd.f32 %v834_v37, %v833_v33  ;;  %v301_v46 = vadd.f32 %v298_v38, %v297_v41  ;;  %v443_v33 = vld [vmem:[%s1676_s2 + $0x60] sm:$0xff]  ;;  %v458_v36 = vld [vmem:[%s1676_s2 + $0xd8] sm:$0xff]  ;;  %v473_v41 = vld [vmem:[%s1676_s2 + $0x150] sm:$0xff] }
  0xf2   :  { %v474_v37 = vld [vmem:[%s1676_s2 + $0x158] sm:$0xff] }
  0xf3   :  { %v299_v43 = vmul.f32 %v1441_v39, %v1441_v39  ;;  %v280_v44 = vadd.f32 %v991_v21, %v835_v40  ;;  %v289_v45 = vadd.f32 %v288_v42, %v1441_v39  ;;  %v461_v21 = vld [vmem:[%s1676_s2 + $0xf0] sm:$0xff]  ;;  %v442_v38 = vld [vmem:[%s1676_s2 + $0x58] sm:$0xff] }
  0xf4   :  { %875 = vmatprep.subr.mxu1 %v461_v21  ;;  %v457_v40 = vld [vmem:[%s1676_s2 + $0xd0] sm:$0xff]  ;;  %v448_v21 = vld [vmem:[%s1676_s2 + $0x88] sm:$0xff] }
  0xf5   :  { %v1450_v47 = vmax.f32 %v280_v44, 0.0  ;;  %v302_v48 = vadd.f32 %v301_v46, %v299_v43  ;;  %876 = vmatpush3.msra.mxu1 %v445_v23  ;;  %v441_v42 = vld [vmem:[%s1676_s2 + $0x50] sm:$0xff]  ;;  %v456_v43 = vld [vmem:[%s1676_s2 + $0xc8] sm:$0xff]  ;;  %v455_v46 = vld [vmem:[%s1676_s2 + $0xc0] sm:$0xff] }
  0xf6   :  { %877 = vmatprep.subr.mxu1 %v460_v24  ;;  %v472_v44 = vld [vmem:[%s1676_s2 + $0x148] sm:$0xff]  ;;  %v447_v24 = vld [vmem:[%s1676_s2 + $0x80] sm:$0xff] }
  0xf7   :  { %v290_v49 = vadd.f32 %v289_v45, %v1450_v47  ;;  %v300_v50 = vmul.f32 %v1450_v47, %v1450_v47  ;;  %878 = vmatpush3.msra.mxu1 %v444_v26  ;;  %v440_v45 = vld [vmem:[%s1676_s2 + $0x48] sm:$0xff]  ;;  %v431_v26 = vld [vmem:[%s1676_s2] sm:$0xff] }
  0xf8   :  { %879 = vmatprep.subr.mxu1 %v459_v27  ;;  %v432_v23 = vld [vmem:[%s1676_s2 + $0x8] sm:$0xff] }
  0xf9   :  { %v291_v51 = vrot.slane %v290_v49, 4  ;;  %v303_v52 = vadd.f32 %v302_v48, %v300_v50  ;;  %880 = vmatpush3.msra.mxu1 %v443_v33  ;;  %v471_v48 = vld [vmem:[%s1676_s2 + $0x140] sm:$0xff]  ;;  %v454_v50 = vld [vmem:[%s1676_s2 + $0xb8] sm:$0xff] }
  0xfa   :  { %881 = vmatprep.subr.mxu1 %v458_v36 }
  0xfb   :  { %v292_v53 = vadd.f32 %v291_v51, %v290_v49  ;;  %v304_v54 = vrot.slane %v303_v52, 4  ;;  %882 = vmatpush3.msra.mxu1 %v442_v38  ;;  %v439_v49 = vld [vmem:[%s1676_s2 + $0x40] sm:$0xff]  ;;  %v470_v51 = vld [vmem:[%s1676_s2 + $0x138] sm:$0xff] }
  0xfc   :  { %883 = vmatprep.subr.mxu1 %v457_v40 }
  0xfd   :  { %v293_v55 = vrot.slane %v292_v53, 2  ;;  %v305_v56 = vadd.f32 %v304_v54, %v303_v52  ;;  %884 = vmatpush3.msra.mxu1 %v441_v42  ;;  %v438_v52 = vld [vmem:[%s1676_s2 + $0x38] sm:$0xff]  ;;  %v469_v54 = vld [vmem:[%s1676_s2 + $0x130] sm:$0xff] }
  0xfe   :  { %885 = vmatprep.subr.mxu1 %v456_v43 }
  0xff   :  { %v294_v57 = vadd.f32 %v293_v55, %v292_v53  ;;  %v306_v58 = vrot.slane %v305_v56, 2  ;;  %886 = vmatpush3.msra.mxu1 %v440_v45  ;;  %v453_v53 = vld [vmem:[%s1676_s2 + $0xb0] sm:$0xff] }
 0x100   :  { %887 = vmatprep.subr.mxu1 %v455_v46  ;;  %v437_v55 = vld [vmem:[%s1676_s2 + $0x30] sm:$0xff] }
 0x101   :  { %v295_v59 = vrot.slane %v294_v57, 1  ;;  %v307_v60 = vadd.f32 %v306_v58, %v305_v56  ;;  %888 = vmatpush3.msra.mxu1 %v439_v49  ;;  %v452_v56 = vld [vmem:[%s1676_s2 + $0xa8] sm:$0xff] }
 0x102   :  { %889 = vmatprep.subr.mxu1 %v454_v50  ;;  %v436_v58 = vld [vmem:[%s1676_s2 + $0x28] sm:$0xff] }
 0x103   :  { %v308_v14 = vrot.slane %v307_v60, 1  ;;  %v296_v15 = vadd.f32 %v295_v59, %v294_v57  ;;  %890 = vmatpush3.msra.mxu1 %v438_v52  ;;  %v468_v57 = vld [vmem:[%s1676_s2 + $0x128] sm:$0xff]  ;;  %v451_v59 = vld [vmem:[%s1676_s2 + $0xa0] sm:$0xff] }
 0x104   :  { %891 = vmatprep.subr.mxu1 %v453_v53 }
 0x105   :  { %v309_v16 = vadd.f32 %v308_v14, %v307_v60  ;;  %892 = vmatpush3.msra.mxu1 %v437_v55  ;;  %v467_v60 = vld [vmem:[%s1676_s2 + $0x120] sm:$0xff] }
 0x106   :  { %893 = vmatprep.subr.mxu1 %v452_v56  ;;  %v435_v14 = vld [vmem:[%s1676_s2 + $0x20] sm:$0xff] }
 0x107   :  { %v311_v17 = vsel %vm310_vm1, %v296_v15, %v309_v16  ;;  %894 = vmatpush3.msra.mxu1 %v436_v58  ;;  %v450_v15 = vld [vmem:[%s1676_s2 + $0x98] sm:$0xff] }
 0x108   :  { %1025 = vmatmul.mubr.f32.vlgmr.msra.gmra.mxu0 %v311_v17  ;;  %895 = vmatprep.subr.mxu1 %v451_v59  ;;  %v466_v16 = vld [vmem:[%s1676_s2 + $0x118] sm:$0xff] }
 0x109   :  { %1028 = vmatpush3.msra.mxu0 %v478_v19  ;;  %896 = vmatpush3.msra.mxu1 %v435_v14  ;;  %v434_v17 = vld [vmem:[%s1676_s2 + $0x18] sm:$0xff]  ;;  %v465_v19 = vld [vmem:[%s1676_s2 + $0x110] sm:$0xff] }
 0x10a   :  { %1029 = vmatprep.subr.mxu0 %v477_v22  ;;  %897 = vmatprep.subr.mxu1 %v450_v15 }
 0x10b   :  { %1030 = vmatpush3.msra.mxu0 %v477_v22  ;;  %898 = vmatpush3.msra.mxu1 %v434_v17  ;;  %v464_v22 = vld [vmem:[%s1676_s2 + $0x108] sm:$0xff] }
 0x10c   :  { %1031 = vmatprep.subr.mxu0 %v476_v25  ;;  %899 = vmatprep.subr.mxu1 %v449_v18 }
 0x10d   :  { %1032 = vmatpush3.msra.mxu0 %v476_v25  ;;  %900 = vmatpush3.msra.mxu1 %v433_v20  ;;  %v463_v25 = vld [vmem:[%s1676_s2 + $0x100] sm:$0xff] }
 0x10e   :  { %1033 = vmatprep.subr.mxu0 %v475_v32  ;;  %901 = vmatprep.subr.mxu1 %v448_v21 }
 0x10f   :  { %1034 = vmatpush3.msra.mxu0 %v475_v32  ;;  %902 = vmatpush3.msra.mxu1 %v432_v23 }
 0x110   :  { %1035 = vmatprep.subr.mxu0 %v474_v37  ;;  %903 = vmatprep.subr.mxu1 %v447_v24 }
 0x111   :  { %1036 = vmatpush3.msra.mxu0 %v474_v37  ;;  %904 = vmatpush3.msra.mxu1 %v431_v26 }
 0x112   :  { %1037 = vmatprep.subr.mxu0 %v473_v41  ;;  %1065 = vmatprep.subr.mxu1 %v1106_v3 }
 0x113   :  { %1038 = vmatpush3.msra.mxu0 %v473_v41  ;;  %v399_v41 = vlaneseq }
 0x114   :  { %1039 = vmatprep.subr.mxu0 %v472_v44 }
 0x115   :  { %1040 = vmatpush3.msra.mxu0 %v472_v44  ;;  %v1601_v42 = vshrl.u32 %v399_v41, 7  ;;  %v287_v44 = vld [vmem:[%s1677_s4] sm:$0x3] }
 0x116   :  { %1041 = vmatprep.subr.mxu0 %v471_v48 }
 0x117   :  { %1042 = vmatpush3.msra.mxu0 %v471_v48  ;;  %v401_v46 = vsub.s32 0, %v1601_v42  ;;  %v409_v52 = vsub.s32 1, %v1601_v42 }
 0x118   :  { %1043 = vmatprep.subr.mxu0 %v470_v51 }
 0x119   :  { %1044 = vmatpush3.msra.mxu0 %v470_v51 }
 0x11a   :  { %1045 = vmatprep.subr.mxu0 %v469_v54 }
 0x11b   :  { %1046 = vmatpush3.msra.mxu0 %v469_v54 }
 0x11c   :  { %1047 = vmatprep.subr.mxu0 %v468_v57 }
 0x11d   :  { %1048 = vmatpush3.msra.mxu0 %v468_v57 }
 0x11e   :  { %1049 = vmatprep.subr.mxu0 %v467_v60 }
 0x11f   :  { %1050 = vmatpush3.msra.mxu0 %v467_v60 }
 0x120   :  { %1051 = vmatprep.subr.mxu0 %v466_v16 }
 0x121   :  { %1052 = vmatpush3.msra.mxu0 %v466_v16 }
 0x122   :  { %1053 = vmatprep.subr.mxu0 %v465_v19 }
 0x123   :  { %1054 = vmatpush3.msra.mxu0 %v465_v19 }
 0x124   :  { %1055 = vmatprep.subr.mxu0 %v464_v22 }
 0x125   :  { %1056 = vmatpush3.msra.mxu0 %v464_v22 }
 0x126   :  { %1057 = vmatprep.subr.mxu0 %v463_v25 }
 0x127   :  { %1058 = vmatpush3.msra.mxu0 %v463_v25 }
 0x1c8   :  { %v378_v27 = vpop.f32.mrf.mxu0 }
 0x1c9   :  { %v382_v32 = vmul.f32 0.001953125, %v378_v27 }
 0x1ca   :  { %v1026_v33 = vpop.f32.mrf.mxu0 }
 0x1cb   :  { %v383_v36 = vmul.f32 %v382_v32, %v382_v32 }
 0x1cd   :  { %v385_v37 = vrot.slane %v383_v36, 7 }
 0x1cf   :  { %v387_v38 = vsub.f32 %v382_v32, %v385_v37 }
 0x1d1   :  { %v388_v40 = vadd.f32 1e-05, %v387_v38 }
 0x1d3   :  { %1102 = vrsqrt.f32 %v388_v40 }
 0x1e0   :  { %v1103_v43 = vpop.eup %1102 }
 0x1e1   :  { %v391_v45 = vrot.slane %v1103_v43, 1 }
 0x1e3   :  { %v393_v48 = vmul.f32 %v391_v45, %v287_v44 }
 0x1e5   :  { %v394_v49 = vmul.f32 %v393_v48, %v382_v32  ;;  %v402_v50 = vrot.slane %v393_v48, %v401_v46 }
 0x1e7   :  { %v396_v51 = vrot.slane %v394_v49, 7  ;;  %v403_v54 = vmul.f32 %v402_v50, %v1437_v35  ;;  %v404_v55 = vmul.f32 %v402_v50, %v1435_v29  ;;  %v405_v56 = vmul.f32 %v402_v50, %v1441_v39 }
 0x1e8   :  { %v406_v57 = vmul.f32 %v402_v50, %v1450_v47 }
 0x1e9   :  { %v398_v53 = vsub.f32 %v287_v44, %v396_v51 }
 0x1eb   :  { %v410_v58 = vrot.slane %v398_v53, %v409_v52 }
 0x1ed   :  { %v411_v59 = vadd.f32 %v410_v58, %v403_v54  ;;  %v412_v60 = vadd.f32 %v410_v58, %v404_v55  ;;  %v413_v14 = vadd.f32 %v410_v58, %v405_v56  ;;  %v414_v15 = vadd.f32 %v410_v58, %v406_v57 }
 0x1ef   :  { %415 = vst [vmem:[#allocation2 + $0x1] sm:$0xff] %v411_v59  ;;  %416 = vst [vmem:[#allocation2 + $0x9] sm:$0xff] %v412_v60  ;;  %543 = vmatprep.mubr.f32.mxu1 %v411_v59 }
 0x1f0   :  { %417 = vst [vmem:[#allocation2 + $0x19] sm:$0xff] %v413_v14  ;;  %418 = vst [vmem:[#allocation2 + $0x21] sm:$0xff] %v414_v15 }
 0x1f6   :  { %v427_v16 = vld [vmem:[#allocation2 + $0x2] sm:$0xff]  ;;  %v428_v17 = vld [vmem:[#allocation2 + $0xa] sm:$0xff] }
 0x1f7   :  { %v419_v35 = vld [vmem:[#allocation2] sm:$0xff]  ;;  %1059 = vmatprep.mubr.f32.mxu0 %v427_v16  ;;  %v420_v39 = vld [vmem:[#allocation2 + $0x8] sm:$0xff]  ;;  %v421_v18 = vld [vmem:[#allocation2 + $0x18] sm:$0xff] }
 0x1f8   :  { %544 = vmatmul.mubr.f32.vlgmr.msra.gmra.mxu1 %v419_v35  ;;  %1060 = vmatmul.mubr.f32.vlgmr.msra.gmra.mxu0 %v428_v17  ;;  %v429_v29 = vld [vmem:[#allocation2 + $0x1a] sm:$0xff]  ;;  %v430_v47 = vld [vmem:[#allocation2 + $0x22] sm:$0xff] }
 0x1f9   :  { %548 = vmatprep.mubr.f32.mxu1 %v412_v60  ;;  %1062 = vmatprep.mubr.f32.mxu0 %v429_v29  ;;  %v422_v19 = vld [vmem:[#allocation2 + $0x20] sm:$0xff] }
 0x1fa   :  { %1066 = vmatpush3.msra.mxu1 %v1325_v61 }
 0x1fb   :  { %1067 = vmatprep.subr.mxu1 %v1106_v3 }
 0x1fc   :  { %549 = vmatmul.mubr.f32.gmra.mxu1 %v420_v39  ;;  %1063 = vmatmul.mubr.f32.gmra.mxu0 %v430_v47 }
 0x1fd   :  { %553 = vmatprep.mubr.f32.mxu1 %v413_v14  ;;  %1068 = vmatpush3.msra.mxu1 %v1332_v62 }
 0x1fe   :  { %1069 = vmatprep.subr.mxu1 %v1106_v3 }
 0x1ff   :  { %1070 = vmatpush3.msra.mxu1 %v1339_v63 }
 0x200   :  { %554 = vmatmul.mubr.f32.gmra.mxu1 %v421_v18  ;;  %1071 = vmatprep.subr.mxu1 %v1106_v3  ;;  %v653_v18 = vld [vmem:[%s1678_s5] sm:$0x3] }
 0x201   :  { %558 = vmatprep.mubr.f32.mxu1 %v414_v15  ;;  %1072 = vmatpush3.msra.mxu1 %v1346_v0 }
 0x202   :  { %1073 = vmatprep.subr.mxu1 %v1106_v3 }
 0x203   :  { %1074 = vmatpush3.msra.mxu1 %v1353_v1 }
 0x204   :  { %559 = vmatmul.mubr.f32.gmra.mxu1 %v422_v19  ;;  %1075 = vmatprep.subr.mxu1 %v1106_v3 }
 0x205   :  { %1097 = vmatprep.mubr.msk.f32.mxu1 %vm1107_vm0, %v1106_v3  ;;  %1076 = vmatpush3.msra.mxu1 %v1360_v2 }
 0x206   :  { %1077 = vmatprep.subr.mxu1 %v1106_v3 }
 0x207   :  { %1078 = vmatpush3.msra.mxu1 %v1367_v4 }
 0x208   :  { %1079 = vmatprep.subr.mxu1 %v1106_v3 }
 0x209   :  { %1080 = vmatpush3.msra.mxu1 %v1374_v5 }
 0x20a   :  { %1081 = vmatprep.subr.mxu1 %v1106_v3 }
 0x20b   :  { %1082 = vmatpush3.msra.mxu1 %v1381_v6 }
 0x20c   :  { %1083 = vmatprep.subr.mxu1 %v1106_v3 }
 0x20d   :  { %1084 = vmatpush3.msra.mxu1 %v1388_v7 }
 0x20e   :  { %1085 = vmatprep.subr.mxu1 %v1106_v3 }
 0x20f   :  { %1086 = vmatpush3.msra.mxu1 %v1395_v8 }
 0x210   :  { %1087 = vmatprep.subr.mxu1 %v1106_v3 }
 0x211   :  { %1088 = vmatpush3.msra.mxu1 %v1402_v9 }
 0x212   :  { %1089 = vmatprep.subr.mxu1 %v1106_v3 }
 0x213   :  { %1090 = vmatpush3.msra.mxu1 %v1408_v10 }
 0x214   :  { %1091 = vmatprep.subr.mxu1 %v1106_v3 }
 0x215   :  { %1092 = vmatpush3.msra.mxu1 %v1414_v11 }
 0x216   :  { %1093 = vmatprep.subr.mxu1 %v1106_v3 }
 0x217   :  { %1094 = vmatpush3.msra.mxu1 %v1423_v12 }
 0x218   :  { %1095 = vmatprep.subr.mxu1 %v1106_v3 }
 0x219   :  { %1096 = vmatpush3.msra.mxu1 %v1430_v13 }
 0x2b8   :  { %v905_v61 = vpop.f32.mrf.mxu1  ;;  %v1061_v62 = vpop.f32.mrf.mxu0 }
 0x2ba   :  { %v906_v63 = vpop.f32.mrf.mxu1  ;;  %v630_v0 = vpop.f32.mrf.mxu0 }
 0x2bb   :  { %v907_v2 = vadd.f32 %v906_v63, %v905_v61 }
 0x2bc   :  { %v908_v1 = vpop.f32.mrf.mxu1  ;;  %v1064_v6 = vpop.f32.mrf.mxu0 }
 0x2bd   :  { %v631_v8 = vadd.f32 %v907_v2, %v630_v0 }
 0x2be   :  { %v909_v4 = vpop.f32.mrf.mxu1  ;;  %v640_v12 = vpop.f32.mrf.mxu0 }
 0x2bf   :  { %v910_v5 = vadd.f32 %v909_v4, %v908_v1  ;;  %v649_v3 = vmax.f32 %v631_v8, 0.0 }
 0x2c0   :  { %v911_v7 = vpop.f32.mrf.mxu1 }
 0x2c1   :  { %v636_v9 = vadd.f32 %v1061_v62, %v910_v5  ;;  %v663_v26 = vmul.f32 %v649_v3, %v649_v3 }
 0x2c2   :  { %v912_v10 = vpop.f32.mrf.mxu1 }
 0x2c3   :  { %v650_v11 = vmax.f32 %v636_v9, 0.0  ;;  %v913_v20 = vadd.f32 %v912_v10, %v911_v7 }
 0x2c4   :  { %v914_v21 = vpop.f32.mrf.mxu1 }
 0x2c5   :  { %v641_v22 = vadd.f32 %v913_v20, %v640_v12  ;;  %v664_v23 = vmul.f32 %v650_v11, %v650_v11  ;;  %v654_v27 = vadd.f32 %v650_v11, %v649_v3 }
 0x2c6   :  { %v915_v13 = vpop.f32.mrf.mxu1 }
 0x2c7   :  { %v651_v24 = vmax.f32 %v641_v22, 0.0  ;;  %v916_v25 = vadd.f32 %v915_v13, %v914_v21  ;;  %v667_v36 = vadd.f32 %v664_v23, %v663_v26 }
 0x2c9   :  { %v665_v32 = vmul.f32 %v651_v24, %v651_v24  ;;  %v646_v33 = vadd.f32 %v1064_v6, %v916_v25  ;;  %v655_v37 = vadd.f32 %v654_v27, %v651_v24 }
 0x2cb   :  { %v652_v38 = vmax.f32 %v646_v33, 0.0  ;;  %v668_v40 = vadd.f32 %v667_v36, %v665_v32 }
 0x2cd   :  { %v656_v41 = vadd.f32 %v655_v37, %v652_v38  ;;  %v666_v43 = vmul.f32 %v652_v38, %v652_v38 }
 0x2cf   :  { %v657_v44 = vrot.slane %v656_v41, 4  ;;  %v669_v45 = vadd.f32 %v668_v40, %v666_v43 }
 0x2d1   :  { %v658_v48 = vadd.f32 %v657_v44, %v656_v41  ;;  %v670_v49 = vrot.slane %v669_v45, 4 }
 0x2d3   :  { %v659_v50 = vrot.slane %v658_v48, 2  ;;  %v671_v51 = vadd.f32 %v670_v49, %v669_v45 }
 0x2d5   :  { %v660_v53 = vadd.f32 %v659_v50, %v658_v48  ;;  %v672_v54 = vrot.slane %v671_v51, 2 }
 0x2d7   :  { %v661_v55 = vrot.slane %v660_v53, 1  ;;  %v673_v56 = vadd.f32 %v672_v54, %v671_v51 }
 0x2d9   :  { %v674_v57 = vrot.slane %v673_v56, 1  ;;  %v662_v58 = vadd.f32 %v661_v55, %v660_v53 }
 0x2db   :  { %v675_v59 = vadd.f32 %v674_v57, %v673_v56 }
 0x2dd   :  { %v676_v60 = vsel %vm310_vm1, %v662_v58, %v675_v59 }
 0x2de   :  { %1098 = vmatmul.mubr.f32.vlgmr.msra.gmra.mxu1 %v676_v60 }
 0x39e   :  { %v743_v14 = vpop.f32.mrf.mxu1 }
 0x39f   :  { %v747_v15 = vmul.f32 0.001953125, %v743_v14 }
 0x3a0   :  { %v1099_v16 = vpop.f32.mrf.mxu1 }
 0x3a1   :  { %v748_v35 = vmul.f32 %v747_v15, %v747_v15 }
 0x3a3   :  { %v750_v17 = vrot.slane %v748_v35, 7 }
 0x3a5   :  { %v752_v29 = vsub.f32 %v747_v15, %v750_v17 }
 0x3a7   :  { %v753_v39 = vadd.f32 1e-05, %v752_v29 }
 0x3a9   :  { %1104 = vrsqrt.f32 %v753_v39 }
 0x3b6   :  { %v1105_v47 = vpop.eup %1104 }
 0x3b7   :  { %v756_v19 = vrot.slane %v1105_v47, 1 }
 0x3b9   :  { %v758_v61 = vmul.f32 %v756_v19, %v653_v18 }
 0x3bb   :  { %v759_v62 = vmul.f32 %v758_v61, %v747_v15  ;;  %v767_v63 = vrot.slane %v758_v61, %v401_v46 }
 0x3bd   :  { %v761_v0 = vrot.slane %v759_v62, 7  ;;  %v768_v2 = vmul.f32 %v767_v63, %v649_v3  ;;  %v769_v4 = vmul.f32 %v767_v63, %v650_v11  ;;  %v770_v5 = vmul.f32 %v767_v63, %v651_v24 }
 0x3be   :  { %v771_v6 = vmul.f32 %v767_v63, %v652_v38 }
 0x3bf   :  { %v763_v1 = vsub.f32 %v653_v18, %v761_v0 }
 0x3c1   :  { %v775_v7 = vrot.slane %v763_v1, %v409_v52 }
 0x3c3   :  { %v776_v8 = vadd.f32 %v775_v7, %v768_v2  ;;  %v777_v9 = vadd.f32 %v775_v7, %v769_v4  ;;  %v778_v10 = vadd.f32 %v775_v7, %v770_v5  ;;  %v779_v20 = vadd.f32 %v775_v7, %v771_v6 }
 0x3c5   :  { %v780_v12 = vadd.f32 %v776_v8, %v1233_v28  ;;  %v781_v21 = vadd.f32 %v777_v9, %v1242_v30  ;;  %v782_v22 = vadd.f32 %v778_v10, %v1247_v31  ;;  %v783_v46 = vadd.f32 %v779_v20, %v1260_v34 }
 0x3c7   :  { %784 = vst [vmem:[%s1679_s6] sm:$0xff] %v780_v12  ;;  %785 = vst [vmem:[%s1679_s6 + $0x8] sm:$0xff] %v781_v21 }
 0x3c8   :  { %786 = vst [vmem:[%s1679_s6 + $0x10] sm:$0xff] %v782_v22  ;;  %787 = vst [vmem:[%s1679_s6 + $0x18] sm:$0xff] %v783_v46 }

</bundles_post_ra>
